<compile_context>
chip_gen: v7x
topology: tpu7x:2x2x1
jax: 0.10.0
libtpu: 0.0.40
codegen_flags: <defaults>
</compile_context>

<pallas_src>
import jax
import jax.numpy as jnp
from jax.experimental import pallas as pl
from jax.experimental.pallas import tpu as pltpu

EPS = 1e-5
LANE = 128
_STAT_ROWS = 8  # sublane-padded partial-stats rows: row0 = sum, row1 = sumsq


def _round_up(x, m):
    return (x + m - 1) // m * m


# --------------------------------------------------------------------------
# Pallas kernels
# --------------------------------------------------------------------------
def conv_stats_kernel(p_ref, w_ref, y_ref, stats_ref):
    """Pass A: y = patches @ w (MXU, f32 accumulate) + per-tile sum / sumsq.

    Stats are reduced from the f32 accumulator BEFORE the (possibly bf16)
    store of y, so BN statistics do not inherit storage rounding.
    """
    y = jnp.dot(p_ref[...], w_ref[...], preferred_element_type=jnp.float32)
    stats_ref[0:1, :] = jnp.sum(y, axis=0, keepdims=True)
    stats_ref[1:2, :] = jnp.sum(y * y, axis=0, keepdims=True)
    y_ref[...] = y.astype(y_ref.dtype)


def bn_relu_kernel(y_ref, s_ref, t_ref, o_ref):
    """Pass B (conv1): out = relu(y*scale + shift), scale/shift pre-folded."""
    o_ref[...] = jnp.maximum(
        y_ref[...].astype(jnp.float32) * s_ref[...] + t_ref[...], 0.0
    ).astype(o_ref.dtype)


def bn_add_relu_kernel(y_ref, s_ref, t_ref, res_ref, o_ref):
    """Pass B (conv2, identity shortcut): relu(y*scale + shift + residual)."""
    o_ref[...] = jnp.maximum(
        y_ref[...].astype(jnp.float32) * s_ref[...] + t_ref[...]
        + res_ref[...].astype(jnp.float32), 0.0
    ).astype(o_ref.dtype)


def bn2_bnsc_add_relu_kernel(y_ref, s2_ref, t2_ref, ysc_ref, ssc_ref, tsc_ref,
                             o_ref):
    """Pass B (conv2 + projection shortcut): relu(BN(y2) + BN(ysc)), folded."""
    o_ref[...] = jnp.maximum(
        y_ref[...].astype(jnp.float32) * s2_ref[...] + t2_ref[...]
        + ysc_ref[...].astype(jnp.float32) * ssc_ref[...] + tsc_ref[...], 0.0
    ).astype(o_ref.dtype)


# --------------------------------------------------------------------------
# Generation-aware VMEM / tile sizing
# --------------------------------------------------------------------------
def _vmem_cap_bytes():
    try:
        return int(pltpu.get_tpu_info().vmem_capacity_bytes)
    except Exception:
        return 64 << 20  # conservative fallback (v7x per-TC VMEM)


def _working_set_budget(cap):
    # Per-step double-buffered working-set target with Mosaic-scratch headroom:
    # ~48 MiB on 128 MiB parts (v5e/v6e), ~24 MiB on v7x's 64 MiB per TC.
    return max(min(cap // 2 - (8 << 20), 48 << 20), 8 << 20)


def _vmem_limit(block_bytes, cap):
    # block_bytes already includes double buffering; add headroom and cap well
    # under this generation's physical VMEM (<=96 MiB on 128 MiB parts,
    # <=48 MiB on v7x).
    hi = max(min(cap - (16 << 20), 96 << 20), 24 << 20)
    return int(min(max(block_bytes + (8 << 20), 32 << 20), hi))


def _pick_conv_tm(M, K, C, in_bytes, y_bytes, budget):
    """Largest power-of-two conv M-tile whose double-buffered set fits budget."""
    if M < 128:
        return max(8, _round_up(M, 8))
    tm = 128
    for cand in (1024, 512, 256, 128):
        need = 2 * (cand * K * in_bytes + K * C * in_bytes
                    + cand * C * y_bytes + _STAT_ROWS * C * 4)
        if need <= budget:
            tm = cand
            break
    # keep >= 2 grid steps so the "parallel" M axis splits across v7x's 2 TCs
    # (and the DMA/compute pipeline has something to overlap everywhere).
    while tm > 128 and M <= tm:
        tm //= 2
    return tm


def _pick_epi_tm(M, row_bytes, budget):
    """Epilogue tile is decoupled from the conv tile: streaming passes want the
    largest tile that fits VMEM (>=512 rows reaches ~85% of HBM BW)."""
    if M < 128:
        return max(8, _round_up(M, 8))
    tm = 128
    for cand in (2048, 1024, 512, 256, 128):
        if 2 * cand * row_bytes + (1 << 20) <= budget:
            tm = cand
            break
    while tm > 128 and M <= tm:
        tm //= 2
    return tm


def _clamp_tm(tm, M):
    return min(tm, max(8, _round_up(M, 8)))


# --------------------------------------------------------------------------
# pallas_call wrappers (tiled over the M row axis)
# --------------------------------------------------------------------------
def _conv_stats(patches, w, tm, y_dtype, vmem_cap):
    """Tiled conv pass A: returns y (Mp, C) in y_dtype and batch stats (2, C)."""
    Mp, K = patches.shape
    C = w.shape[1]
    grid_m = Mp // tm
    blk = 2 * (tm * K * patches.dtype.itemsize + K * C * w.dtype.itemsize
               + tm * C * jnp.dtype(y_dtype).itemsize + _STAT_ROWS * C * 4)
    y, partial = pl.pallas_call(
        conv_stats_kernel,
        grid=(grid_m,),
        in_specs=[pl.BlockSpec((tm, K), lambda i: (i, 0)),       # patches tile
                  pl.BlockSpec((K, C), lambda i: (0, 0))],       # weights resident
        out_specs=(pl.BlockSpec((tm, C), lambda i: (i, 0)),      # conv output tile
                   pl.BlockSpec((_STAT_ROWS, C), lambda i: (i, 0))),  # partial stats
        out_shape=(jax.ShapeDtypeStruct((Mp, C), y_dtype),
                   jax.ShapeDtypeStruct((grid_m * _STAT_ROWS, C), jnp.float32)),
        compiler_params=pltpu.CompilerParams(
            dimension_semantics=("parallel",),
            vmem_limit_bytes=_vmem_limit(blk, vmem_cap)),
    )(patches, w)
    # tiny (grid, 2, C) combine of per-tile partial sums (host-side glue).
    stats = partial.reshape(grid_m, _STAT_ROWS, C)[:, :2, :].sum(axis=0)
    return y, stats


def _epilogue(kernel, out_dtype, tm, args, tiled, vmem_cap):
    """Tiled folded-BN / ReLU / residual epilogue pass B."""
    Mp, C = args[0].shape
    grid_m = Mp // tm
    in_specs = []
    blk = 2 * tm * C * jnp.dtype(out_dtype).itemsize
    for a, t in zip(args, tiled):
        if t:   # streamed over M
            in_specs.append(pl.BlockSpec((tm, a.shape[1]), lambda i: (i, 0)))
            blk += 2 * tm * a.shape[1] * a.dtype.itemsize
        else:   # small per-channel (1, C) vectors, resident in VMEM
            in_specs.append(pl.BlockSpec(a.shape, lambda i, nd=a.ndim: (0,) * nd))
            blk += 2 * a.size * a.dtype.itemsize
    return pl.pallas_call(
        kernel,
        grid=(grid_m,),
        in_specs=in_specs,
        out_specs=pl.BlockSpec((tm, C), lambda i: (i, 0)),
        out_shape=jax.ShapeDtypeStruct((Mp, C), out_dtype),
        compiler_params=pltpu.CompilerParams(
            dimension_semantics=("parallel",),
            vmem_limit_bytes=_vmem_limit(blk, vmem_cap)),
    )(*args)


# --------------------------------------------------------------------------
# Plain-JAX glue: im2col, weight layout, padding, host-side BN fold
# --------------------------------------------------------------------------
def _im2col(x_nhwc, k, stride, pad):
    # TODO(synk): replace with in-kernel halo DMA + 9 shifted matmuls.
    N, H, W, C = x_nhwc.shape
    xp = jnp.pad(x_nhwc, ((0, 0), (pad, pad), (pad, pad), (0, 0)))
    Ho = (H + 2 * pad - k) // stride + 1
    Wo = (W + 2 * pad - k) // stride + 1
    cols = []
    for kh in range(k):
        for kw in range(k):
            cols.append(xp[:, kh:kh + (Ho - 1) * stride + 1:stride,
                           kw:kw + (Wo - 1) * stride + 1:stride, :])
    patches = jnp.concatenate(cols, axis=-1)               # order (kh, kw, c)
    return patches.reshape(N * Ho * Wo, k * k * C), (N, Ho, Wo)


def _conv_w_matrix(w_oihw, out_pad, dtype):
    # (O, I, Kh, Kw) -> zero-pad output channels only -> (Kh*Kw*I, out_pad)
    O, I, Kh, Kw = w_oihw.shape
    w = jnp.pad(w_oihw, ((0, out_pad - O), (0, 0), (0, 0), (0, 0)))
    return (jnp.transpose(w, (2, 3, 1, 0))
            .reshape(Kh * Kw * I, out_pad).astype(dtype))


def _pad2(a, rows, cols):
    # Zero pad rows/lanes; zeros contribute nothing to sum/sumsq and fold to
    # scale=shift=0, so the batch statistics stay exact.
    return jnp.pad(a, ((0, rows - a.shape[0]), (0, cols - a.shape[1])))


def _fold_host(stats, gamma, beta, Cp, inv_m):
    """Fold combined batch stats + gamma/beta into per-channel (scale, shift)."""
    mean = stats[0] * inv_m
    var = jnp.maximum(stats[1] * inv_m - mean * mean, 0.0)
    g = jnp.pad(gamma.astype(jnp.float32), (0, Cp - gamma.shape[0]))
    b = jnp.pad(beta.astype(jnp.float32), (0, Cp - beta.shape[0]))
    scale = g * jax.lax.rsqrt(var + EPS)
    shift = b - mean * scale
    return scale.reshape(1, Cp), shift.reshape(1, Cp)


# --------------------------------------------------------------------------
# ResidualBlock forward (Pallas)
# --------------------------------------------------------------------------
def residual_block_forward(x_nchw, params, inplanes, planes, stride,
                           tm=None, compute_dtype=jnp.bfloat16,
                           out_dtype=jnp.float32):
    vmem_cap = _vmem_cap_bytes()
    budget = _working_set_budget(vmem_cap)
    cbytes = jnp.dtype(compute_dtype).itemsize
    obytes = jnp.dtype(out_dtype).itemsize
    Cp = _round_up(planes, LANE)                 # lane-dense output channels

    # NCHW -> NHWC exactly once; cast to compute dtype so the 9x-amplified
    # im2col intermediate is materialized directly at compute precision.
    x = jnp.transpose(x_nchw, (0, 2, 3, 1)).astype(compute_dtype)

    # --- conv1 (3x3, stride) + BN1 stats -------------------------------------
    p1, (N, Ho, Wo) = _im2col(x, 3, stride, 1)
    M = N * Ho * Wo
    inv_m = 1.0 / M
    K1 = p1.shape[1]
    if tm is None:
        tm1c = _pick_conv_tm(M, K1, Cp, cbytes, cbytes, budget)
        tm1e = _pick_epi_tm(M, 2 * Cp * cbytes, budget)
    else:
        tm1c = tm1e = _clamp_tm(tm, M)
    Mp1 = _round_up(M, max(tm1c, tm1e))
    p1p = _pad2(p1, Mp1, K1)                                  # pad rows are zero
    w1m = _conv_w_matrix(params["w1"], Cp, compute_dtype)
    y1, st1 = _conv_stats(p1p, w1m, tm1c, compute_dtype, vmem_cap)
    s1, t1 = _fold_host(st1, params["gamma1"], params["beta1"], Cp, inv_m)
    a1 = _epilogue(bn_relu_kernel, compute_dtype, tm1e,
                   [y1, s1, t1], [True, False, False], vmem_cap)

    # --- conv2 (3x3, stride 1) + BN2 stats ------------------------------------
    # im2col on the true `planes` channels so K2 = 9*planes (not 9*Cp).
    a1_nhwc = a1[:M, :planes].reshape(N, Ho, Wo, planes)
    p2, _ = _im2col(a1_nhwc, 3, 1, 1)
    K2 = p2.shape[1]
    if tm is None:
        tm2c = _pick_conv_tm(M, K2, Cp, cbytes, cbytes, budget)
        tm2e = _pick_epi_tm(M, Cp * (2 * cbytes + obytes), budget)
    else:
        tm2c = tm2e = _clamp_tm(tm, M)
    Mp2 = _round_up(M, max(tm2c, tm2e))
    p2p = _pad2(p2, Mp2, K2)
    w2m = _conv_w_matrix(params["w2"], Cp, compute_dtype)
    y2, st2 = _conv_stats(p2p, w2m, tm2c, compute_dtype, vmem_cap)
    s2, t2 = _fold_host(st2, params["gamma2"], params["beta2"], Cp, inv_m)

    # --- residual + folded BN + ReLU epilogue ---------------------------------
    if inplanes != planes or stride > 1:
        # projection shortcut: 1x1 stride-s conv == strided subsample + matmul
        xs = x[:, ::stride, ::stride, :].reshape(M, inplanes)
        xsp = _pad2(xs, Mp2, inplanes)
        wscm = _conv_w_matrix(params["wsc"], Cp, compute_dtype)
        ysc, stsc = _conv_stats(xsp, wscm, tm2c, compute_dtype, vmem_cap)
        ssc, tsc = _fold_host(stsc, params["gammasc"], params["betasc"], Cp, inv_m)
        out = _epilogue(bn2_bnsc_add_relu_kernel, out_dtype, tm2e,
                        [y2, s2, t2, ysc, ssc, tsc],
                        [True, False, False, True, False, False], vmem_cap)
    else:
        res = _pad2(x.reshape(M, inplanes), Mp2, Cp)          # identity residual
        out = _epilogue(bn_add_relu_kernel, out_dtype, tm2e,
                        [y2, s2, t2, res],
                        [True, False, False, True], vmem_cap)

    out_nhwc = out[:M, :planes].reshape(N, Ho, Wo, planes)
    return jnp.transpose(out_nhwc, (0, 3, 1, 2))              # NHWC -> NCHW once


# --------------------------------------------------------------------------
# Pure-JAX f32 reference (the PyTorch-module semantics)
# --------------------------------------------------------------------------
def _ref_bn(y, gamma, beta):
    mean = jnp.mean(y, axis=(0, 2, 3), keepdims=True)
    var = jnp.mean((y - mean) ** 2, axis=(0, 2, 3), keepdims=True)
    return ((y - mean) * jax.lax.rsqrt(var + EPS)
            * gamma.reshape(1, -1, 1, 1) + beta.reshape(1, -1, 1, 1))


def residual_block_reference(x, params, inplanes, planes, stride):
    conv = lambda a, w, s, p: jax.lax.conv_general_dilated(
        a, w, (s, s), [(p, p), (p, p)],
        dimension_numbers=("NCHW", "OIHW", "NCHW"))
    residual = x
    if inplanes != planes or stride > 1:
        residual = _ref_bn(conv(x, params["wsc"], stride, 0),
                           params["gammasc"], params["betasc"])
    y = jax.nn.relu(_ref_bn(conv(x, params["w1"], stride, 1),
                            params["gamma1"], params["beta1"]))
    return jax.nn.relu(_ref_bn(conv(y, params["w2"], 1, 1),
                               params["gamma2"], params["beta2"]) + residual)


def _make_params(key, inplanes, planes):
    ks = jax.random.split(key, 10)
    return {
        "w1": jax.random.normal(ks[0], (planes, inplanes, 3, 3), jnp.float32) * 0.1,
        "gamma1": 1.0 + 0.1 * jax.random.normal(ks[1], (planes,), jnp.float32),
        "beta1": 0.1 * jax.random.normal(ks[2], (planes,), jnp.float32),
        "w2": jax.random.normal(ks[3], (planes, planes, 3, 3), jnp.float32) * 0.1,
        "gamma2": 1.0 + 0.1 * jax.random.normal(ks[4], (planes,), jnp.float32),
        "beta2": 0.1 * jax.random.normal(ks[5], (planes,), jnp.float32),
        "wsc": jax.random.normal(ks[6], (planes, inplanes, 1, 1), jnp.float32) * 0.1,
        "gammasc": 1.0 + 0.1 * jax.random.normal(ks[7], (planes,), jnp.float32),
        "betasc": 0.1 * jax.random.normal(ks[8], (planes,), jnp.float32),
    }


if __name__ == "__main__":
    key = jax.random.PRNGKey(0)
    k_x1, k_p1, k_x2, k_p2 = jax.random.split(key, 4)

    # Case 1: projection shortcut (inplanes != planes, stride > 1)
    inplanes, planes, stride = 4, 8, 2
    x1 = jax.random.normal(k_x1, (2, inplanes, 16, 16), jnp.float32)
    params1 = _make_params(k_p1, inplanes, planes)
    ref1 = residual_block_reference(x1, params1, inplanes, planes, stride)

    # Case 2: identity shortcut (inplanes == planes, stride == 1)
    inplanes2, planes2, stride2 = 8, 8, 1
    x2 = jax.random.normal(k_x2, (2, inplanes2, 16, 16), jnp.float32)
    params2 = _make_params(k_p2, inplanes2, planes2)
    ref2 = residual_block_reference(x2, params2, inplanes2, planes2, stride2)

    # -- structural correctness at f32 (tight tolerance) -----------------------
    # tm=128 keeps a multi-step grid on these small shapes (M = 512 -> 4 tiles)
    # so the tiled partial-stats combine path is actually exercised.
    o1 = jax.block_until_ready(residual_block_forward(
        x1, params1, inplanes, planes, stride, tm=128, compute_dtype=jnp.float32))
    assert o1.shape == (2, planes, 8, 8), o1.shape
    assert jnp.allclose(o1, ref1, atol=1e-3, rtol=1e-3), \
        f"f32 mismatch (projection), max|diff|={float(jnp.max(jnp.abs(o1 - ref1)))}"

    o2 = jax.block_until_ready(residual_block_forward(
        x2, params2, inplanes2, planes2, stride2, tm=128, compute_dtype=jnp.float32))
    assert o2.shape == (2, planes2, 16, 16), o2.shape
    assert jnp.allclose(o2, ref2, atol=1e-3, rtol=1e-3), \
        f"f32 mismatch (identity), max|diff|={float(jnp.max(jnp.abs(o2 - ref2)))}"

    # -- performance configuration: bf16 streams, f32 MXU accumulation, and
    #    auto (generation-aware) tile / VMEM sizing. Sanity-check only: bf16
    #    inputs/intermediates give ~1-2% relative drift vs the f32 reference.
    b1o = jax.block_until_ready(residual_block_forward(
        x1, params1, inplanes, planes, stride, compute_dtype=jnp.bfloat16))
    b2o = jax.block_until_ready(residual_block_forward(
        x2, params2, inplanes2, planes2, stride2, compute_dtype=jnp.bfloat16))
    assert float(jnp.max(jnp.abs(b1o - ref1))) < 0.25, "bf16 drift too large (projection)"
    assert float(jnp.max(jnp.abs(b2o - ref2))) < 0.25, "bf16 drift too large (identity)"

    print("KERNEL_OK")
</pallas_src>

<mosaic_0001>
module attributes {stable_mosaic.version = 11 : i64} {
  func.func @conv_stats_kernel(%arg0: i32, %arg1: memref<128x36xf32, #tpu.memory_space<vmem>>, %arg2: memref<36x128xf32, #tpu.memory_space<vmem>>, %arg3: memref<128x128xf32, #tpu.memory_space<vmem>>, %arg4: memref<8x128xf32, #tpu.memory_space<vmem>>) attributes {dimension_semantics = [#tpu.dimension_semantics<parallel>], iteration_bounds = array<i64: 1>, scalar_prefetch = 0 : i64, scratch_operands = 0 : i64, tpu.core_type = #tpu.core_type<tc>, window_params = [{transform_indices = @transform_0, window_bounds = array<i64: 128, 36>}, {pipeline_mode = #tpu.pipeline_mode<synchronous>, transform_indices = @transform_1, window_bounds = array<i64: 36, 128>}, {transform_indices = @transform_2, window_bounds = array<i64: 128, 128>}, {transform_indices = @transform_3, window_bounds = array<i64: 8, 128>}]} {
    %c0 = arith.constant 0 : index
    %c0_0 = arith.constant 0 : index
    %0 = vector.load %arg1[%c0, %c0_0] : memref<128x36xf32, #tpu.memory_space<vmem>>, vector<128x36xf32>
    %c0_1 = arith.constant 0 : index
    %c0_2 = arith.constant 0 : index
    %1 = vector.load %arg2[%c0_1, %c0_2] : memref<36x128xf32, #tpu.memory_space<vmem>>, vector<36x128xf32>
    %cst = arith.constant dense<0.000000e+00> : vector<128x128xf32>
    %2 = tpu.matmul %0, %1, %cst {dimension_numbers = #tpu.dot_dimension_numbers<[1], [0], [0], [1], [0, 0, 1, 1], [], []>} : vector<128x36xf32>, vector<36x128xf32>, vector<128x128xf32> -> vector<128x128xf32>
    %cst_3 = arith.constant dense<0.000000e+00> : vector<128xf32>
    %3 = vector.multi_reduction <add>, %2, %cst_3 [0] : vector<128x128xf32> to vector<128xf32>
    %4 = vector.shape_cast %3 : vector<128xf32> to vector<1x128xf32>
    %c0_4 = arith.constant 0 : index
    %c0_5 = arith.constant 0 : index
    %5 = vector.load %arg4[%c0_4, %c0_5] : memref<8x128xf32, #tpu.memory_space<vmem>>, vector<1x128xf32>
    tpu.vector_store %arg4[%c0_4, %c0_5], %4 {strides = array<i32>} : memref<8x128xf32, #tpu.memory_space<vmem>>, vector<1x128xf32>,
    %6 = arith.mulf %2, %2 : vector<128x128xf32>
    %cst_6 = arith.constant dense<0.000000e+00> : vector<128xf32>
    %7 = vector.multi_reduction <add>, %6, %cst_6 [0] : vector<128x128xf32> to vector<128xf32>
    %8 = vector.shape_cast %7 : vector<128xf32> to vector<1x128xf32>
    %c1 = arith.constant 1 : index
    %c0_7 = arith.constant 0 : index
    %9 = vector.load %arg4[%c1, %c0_7] : memref<8x128xf32, #tpu.memory_space<vmem>>, vector<1x128xf32>
    tpu.vector_store %arg4[%c1, %c0_7], %8 {strides = array<i32>} : memref<8x128xf32, #tpu.memory_space<vmem>>, vector<1x128xf32>,
    %c0_8 = arith.constant 0 : index
    %c0_9 = arith.constant 0 : index
    %10 = vector.load %arg3[%c0_8, %c0_9] : memref<128x128xf32, #tpu.memory_space<vmem>>, vector<128x128xf32>
    tpu.vector_store %arg3[%c0_8, %c0_9], %2 {strides = array<i32>} : memref<128x128xf32, #tpu.memory_space<vmem>>, vector<128x128xf32>,
    return
  }
  func.func @transform_0(%arg0: i32) -> (i32, i32) {
    %c0_i32 = arith.constant 0 : i32
    %c0_i32_0 = arith.constant 0 : i32
    return %arg0, %c0_i32 : i32, i32
  }
  func.func @transform_1(%arg0: i32) -> (i32, i32) {
    %c0_i32 = arith.constant 0 : i32
    %c0_i32_0 = arith.constant 0 : i32
    %c0_i32_1 = arith.constant 0 : i32
    return %c0_i32, %c0_i32_0 : i32, i32
  }
  func.func @transform_2(%arg0: i32) -> (i32, i32) {
    %c0_i32 = arith.constant 0 : i32
    %c0_i32_0 = arith.constant 0 : i32
    return %arg0, %c0_i32 : i32, i32
  }
  func.func @transform_3(%arg0: i32) -> (i32, i32) {
    %c0_i32 = arith.constant 0 : i32
    %c0_i32_0 = arith.constant 0 : i32
    return %arg0, %c0_i32 : i32, i32
  }
}

</mosaic_0001>

<bundles_post_ra>
// kernel: tpu_custom_call.1
= control target key start
LH: loop header
LB: loop body
LE: loop exit
PB: predicated region body
PF: predicated region fallthrough
CT: control target
= control target key end

     0   :  { %9 = vsyncpa [#allocation3], 0  ;;  %vm36_vm0 = vcmask 293888   ;;  %vm85_vm1 = vcmask 1043456   ;;  %s623_s0 = inlined_call_operand.vmem [shape: f32[128,36], index: 0, kind: input, shape index: {}]   ;;  %s624_s1 = inlined_call_operand.vmem [shape: f32[36,128], index: 1, kind: input, shape index: {}]   ;;  %s625_s2 = inlined_call_operand.hbm [shape: f32[128,128], index: 2, kind: output, shape index: {0}]   ;;  %s626_s3 = inlined_call_operand.hbm [shape: f32[8,128], index: 3, kind: output, shape index: {1}]  }
   0x1   :  { %v31_v0 = vld [vmem:[%s624_s1] sm:$0xff]  ;;  %v32_v1 = vld [vmem:[%s624_s1 + $0x8] sm:$0xff]  ;;  %v33_v2 = vld [vmem:[%s624_s1 + $0x10] sm:$0xff] }
   0x2   :  { %v412_v3 = vpack.c.bf16 %v32_v1, %v31_v0  ;;  %v34_v4 = vld [vmem:[%s624_s1 + $0x18] sm:$0xff]  ;;  %v15_v5 = vld [vmem:[%s623_s0] sm:$0xff] }
   0x3   :  { %v416_v6 = vpack.c.bf16 %v34_v4, %v33_v2  ;;  %388 = vmatprep.mubr.msk.f32.mxu0 %vm36_vm0, %v15_v5  ;;  %v23_v7 = vld [vmem:[%s623_s0 + $0x40] sm:$0xff] }
   0x4   :  { %413 = vmatprep.subr.bf16.mxu0 %v412_v3  ;;  %420 = vmatprep.subr.bf16.mxu1 %v412_v3  ;;  %v35_v8 = vld [vmem:[%s624_s1 + $0x20] sm:$0xf] }
   0x5   :  { %415 = vmatpush3.bf16.msra.mxu0 %v412_v3  ;;  %423 = vmatpush3.bf16.msra.mxu1 %v412_v3 }
   0x6   :  { %417 = vmatprep.subr.bf16.mxu0 %v416_v6  ;;  %421 = vmatprep.subr.bf16.mxu1 %v416_v6 }
   0x7   :  { %400 = vmatprep.mubr.msk.f32.mxu1 %vm36_vm0, %v23_v7 }
   0x8   :  { %10 = vsyncpa [#allocation5], 0  ;;  %v16_v9 = vld [vmem:[%s623_s0 + $0x8] sm:$0xff]  ;;  %v17_v11 = vld [vmem:[%s623_s0 + $0x10] sm:$0xff] }
   0x9   :  { %419 = vmatpush3.bf16.msra.mxu0 %v416_v6  ;;  %424 = vmatpush3.bf16.msra.mxu1 %v416_v6  ;;  %v24_v10 = vld [vmem:[%s623_s0 + $0x48] sm:$0xff]  ;;  %v25_v12 = vld [vmem:[%s623_s0 + $0x50] sm:$0xff]  ;;  %v18_v13 = vld [vmem:[%s623_s0 + $0x18] sm:$0xff] }
   0xa   :  { %386 = vmatprep.subr.msk.mxu0 %vm85_vm1, %v35_v8  ;;  %422 = vmatprep.subr.msk.mxu1 %vm85_vm1, %v35_v8  ;;  %v26_v14 = vld [vmem:[%s623_s0 + $0x58] sm:$0xff]  ;;  %v19_v15 = vld [vmem:[%s623_s0 + $0x20] sm:$0xff]  ;;  %v20_v17 = vld [vmem:[%s623_s0 + $0x28] sm:$0xff] }
   0xb   :  { %v27_v16 = vld [vmem:[%s623_s0 + $0x60] sm:$0xff]  ;;  %v28_v18 = vld [vmem:[%s623_s0 + $0x68] sm:$0xff]  ;;  %v21_v19 = vld [vmem:[%s623_s0 + $0x30] sm:$0xff] }
   0xc   :  { %v29_v20 = vld [vmem:[%s623_s0 + $0x70] sm:$0xff]  ;;  %v22_v21 = vld [vmem:[%s623_s0 + $0x38] sm:$0xff] }
   0xd   :  { %387 = vmatpush3.msk.msra.mxu0 %vm85_vm1, %v35_v8  ;;  %425 = vmatpush3.msk.msra.mxu1 %vm85_vm1, %v35_v8  ;;  %v30_v22 = vld [vmem:[%s623_s0 + $0x78] sm:$0xff]  ;;  %s478_s0 = smov [#allocation2]  }
   0xe   :  { %389 = vmatmul.mubr.msk.f32.vlgmr.msra.gmra.mrb[0].mxu0 %vm36_vm0, %v16_v9  ;;  %401 = vmatmul.mubr.msk.f32.vlgmr.msra.gmra.mrb[0].mxu1 %vm36_vm0, %v24_v10  ;;  %s315_s26 = sshll.u32 %s478_s0, 4  ;;  %s316_s26 = int_to_ptr.vmem [resolvable:$true] %s315_s26 }
   0xf   :  { %391 = vmatprep.mubr.msk.f32.mxu0 %vm36_vm0, %v17_v11  ;;  %403 = vmatprep.mubr.msk.f32.mxu1 %vm36_vm0, %v25_v12  ;;  %s430_s27 = scalar_lea.vmem %s316_s26, 2048  ;;  %p435_p1 = scmp.lt.s32.totalorder %s316_s26, %s316_s26 }
  0x10   :  { %p431_p0 = scmp.ne.s32.totalorder %s316_s26, %s430_s27  ;;  %p436_p2 = scmp.lt.s32.totalorder %s430_s27, %s430_s27 }
  0x12   :  { %392 = vmatmul.mubr.msk.f32.gmra.mrb[2].mxu0 %vm36_vm0, %v18_v13  ;;  %404 = vmatmul.mubr.msk.f32.gmra.mrb[2].mxu1 %vm36_vm0, %v26_v14  ;;  %p437_p3 = por %p436_p2, %p435_p1 }
  0x13   :  { %394 = vmatprep.mubr.msk.f32.mxu0 %vm36_vm0, %v19_v15  ;;  %406 = vmatprep.mubr.msk.f32.mxu1 %vm36_vm0, %v27_v16 }
  0x14   :  { %p438_p4 = pnand %p437_p3, %p431_p0 }
  0x16   :  { %395 = vmatmul.mubr.msk.f32.gmra.mrb[4].mxu0 %vm36_vm0, %v20_v17  ;;  %407 = vmatmul.mubr.msk.f32.gmra.mrb[4].mxu1 %vm36_vm0, %v28_v18 }
  0x17   :  { %397 = vmatprep.mubr.msk.f32.mxu0 %vm36_vm0, %v21_v19  ;;  %409 = vmatprep.mubr.msk.f32.mxu1 %vm36_vm0, %v29_v20 }
  0x1a   :  { %398 = vmatmul.mubr.msk.f32.gmra.mrb[6].mxu0 %vm36_vm0, %v22_v21  ;;  %410 = vmatmul.mubr.msk.f32.gmra.mrb[6].mxu1 %vm36_vm0, %v30_v22 }
  0xe1   :  { %v390_v23 = vpop.f32.mrb[0].mxu0  ;;  %v581_v24 = vpop.f32.mrb[0].mxu1 }
  0xe2   :  { %v257_v25 = vmul.f32 %v390_v23, %v390_v23  ;;  %295 = vst [vmem:[#allocation2 + $0x8] sm:$0xff] %v390_v23  ;;  %v155_v26 = vpop.f32.mrb[1].mxu0  ;;  %303 = vst [vmem:[#allocation2 + $0x48] sm:$0xff] %v581_v24  ;;  %v584_v27 = vpop.f32.mrb[1].mxu1 }
  0xe3   :  { %v234_v28 = vadd.f32 %v390_v23, %v155_v26  ;;  %v256_v29 = vmul.f32 %v155_v26, %v155_v26  ;;  %294 = vst [vmem:[#allocation2] sm:$0xff] %v155_v26  ;;  %302 = vst [vmem:[#allocation2 + $0x40] sm:$0xff] %v584_v27 }
  0xe5   :  { %v272_v30 = vadd.f32 %v257_v25, %v256_v29  ;;  %v393_v31 = vpop.f32.mrb[2].mxu0  ;;  %v587_v32 = vpop.f32.mrb[2].mxu1 }
  0xe6   :  { %297 = vst [vmem:[#allocation2 + $0x18] sm:$0xff] %v393_v31  ;;  %v165_v33 = vpop.f32.mrb[3].mxu0  ;;  %305 = vst [vmem:[#allocation2 + $0x58] sm:$0xff] %v587_v32  ;;  %v205_v34 = vpop.f32.mrb[3].mxu1  ;;  %v259_v37 = vmul.f32 %v393_v31, %v393_v31 }
  0xe7   :  { %v235_v35 = vadd.f32 %v234_v28, %v165_v33  ;;  %v258_v36 = vmul.f32 %v165_v33, %v165_v33  ;;  %296 = vst [vmem:[#allocation2 + $0x10] sm:$0xff] %v165_v33  ;;  %304 = vst [vmem:[#allocation2 + $0x50] sm:$0xff] %v205_v34 }
  0xe9   :  { %v273_v38 = vadd.f32 %v272_v30, %v258_v36  ;;  %v396_v39 = vpop.f32.mrb[4].mxu0  ;;  %v236_v40 = vadd.f32 %v393_v31, %v235_v35  ;;  %v408_v41 = vpop.f32.mrb[4].mxu1 }
  0xea   :  { %299 = vst [vmem:[#allocation2 + $0x28] sm:$0xff] %v396_v39  ;;  %v175_v42 = vpop.f32.mrb[5].mxu0  ;;  %307 = vst [vmem:[#allocation2 + $0x68] sm:$0xff] %v408_v41  ;;  %v215_v43 = vpop.f32.mrb[5].mxu1  ;;  %v261_v47 = vmul.f32 %v396_v39, %v396_v39 }
  0xeb   :  { %v237_v44 = vadd.f32 %v236_v40, %v175_v42  ;;  %v260_v45 = vmul.f32 %v175_v42, %v175_v42  ;;  %v274_v46 = vadd.f32 %v273_v38, %v259_v37  ;;  %298 = vst [vmem:[#allocation2 + $0x20] sm:$0xff] %v175_v42  ;;  %306 = vst [vmem:[#allocation2 + $0x60] sm:$0xff] %v215_v43 }
  0xed   :  { %v275_v48 = vadd.f32 %v274_v46, %v260_v45  ;;  %v399_v49 = vpop.f32.mrb[6].mxu0  ;;  %v238_v50 = vadd.f32 %v396_v39, %v237_v44  ;;  %v411_v51 = vpop.f32.mrb[6].mxu1 }
  0xee   :  { %301 = vst [vmem:[#allocation2 + $0x38] sm:$0xff] %v399_v49  ;;  %v185_v52 = vpop.f32.mrb[7].mxu0  ;;  %309 = vst [vmem:[#allocation2 + $0x78] sm:$0xff] %v411_v51  ;;  %v225_v53 = vpop.f32.mrb[7].mxu1 }
  0xef   :  { %v239_v54 = vadd.f32 %v238_v50, %v185_v52  ;;  %v262_v55 = vmul.f32 %v185_v52, %v185_v52  ;;  %v276_v56 = vadd.f32 %v275_v48, %v261_v47  ;;  %300 = vst [vmem:[#allocation2 + $0x30] sm:$0xff] %v185_v52  ;;  %308 = vst [vmem:[#allocation2 + $0x70] sm:$0xff] %v225_v53 }
  0xf0   :  { %441 = shalt.err (!%p438_p4)
}
  0xf1   :  { %s442_s30 = scalar_lea.hbm %s625_s2, 2048 }
  0xf2   :  { %p443_p5 = scmp.ne.s32.totalorder %s625_s2, %s442_s30  ;;  %p446_p6 = scmp.lt.u32.totalorder %s442_s30, %s625_s2 }
  0xf4   :  { %p448_p7 = pnand %p446_p6, %p443_p5 }
  0xf6   :  { %451 = shalt.err (!%p448_p7)
}
  0xf7   :  { %s479_s7 = smov 128   ;;  %s480_s8 = smov 8   ;;  %v263_v57 = vmul.f32 %v399_v49, %v399_v49  ;;  %v240_v58 = vadd.f32 %v399_v49, %v239_v54  ;;  %v277_v59 = vadd.f32 %v276_v56, %v262_v55  ;;  %v264_v60 = vmul.f32 %v584_v27, %v584_v27 }
  0xf8   :  { %321 = dma.vmem_to_hbm [thread:$0]  %s316_s26, 2048, %s625_s2, [#allocation3], %s479_s7, %s479_s7, %s480_s8   ;;  %v265_v63 = vmul.f32 %v581_v24, %v581_v24  ;;  %v266_v2 = vmul.f32 %v205_v34, %v205_v34  ;;  %v267_v5 = vmul.f32 %v587_v32, %v587_v32  ;;  %v268_v8 = vmul.f32 %v215_v43, %v215_v43 }
  0xf9   :  { %v278_v61 = vadd.f32 %v277_v59, %v263_v57  ;;  %v241_v62 = vadd.f32 %v240_v58, %v584_v27  ;;  %v269_v11 = vmul.f32 %v408_v41, %v408_v41  ;;  %v270_v14 = vmul.f32 %v225_v53, %v225_v53  ;;  %s481_s2 = smov [#allocation4]  }
  0xfa   :  { %v271_v17 = vmul.f32 %v411_v51, %v411_v51  ;;  %s328_s11 = sshll.u32 %s481_s2, 4  ;;  %s329_s11 = int_to_ptr.vmem [resolvable:$true] %s328_s11 }
  0xfb   :  { %v279_v0 = vadd.f32 %v278_v61, %v264_v60  ;;  %v242_v1 = vadd.f32 %v581_v24, %v241_v62  ;;  %s452_s12 = scalar_lea.vmem %s329_s11, 128  ;;  %p457_p9 = scmp.lt.s32.totalorder %s329_s11, %s329_s11 }
  0xfc   :  { %p453_p8 = scmp.ne.s32.totalorder %s329_s11, %s452_s12  ;;  %p458_p10 = scmp.lt.s32.totalorder %s452_s12, %s452_s12 }
  0xfd   :  { %v243_v3 = vadd.f32 %v242_v1, %v205_v34  ;;  %v280_v4 = vadd.f32 %v279_v0, %v265_v63 }
  0xfe   :  { %p459_p11 = por %p458_p10, %p457_p9 }
  0xff   :  { %v281_v6 = vadd.f32 %v280_v4, %v266_v2  ;;  %v244_v7 = vadd.f32 %v587_v32, %v243_v3 }
 0x100   :  { %p460_p12 = pnand %p459_p11, %p453_p8 }
 0x101   :  { %v245_v9 = vadd.f32 %v244_v7, %v215_v43  ;;  %v282_v10 = vadd.f32 %v281_v6, %v267_v5 }
 0x103   :  { %v283_v12 = vadd.f32 %v282_v10, %v268_v8  ;;  %v246_v13 = vadd.f32 %v408_v41, %v245_v9 }
 0x105   :  { %v247_v15 = vadd.f32 %v246_v13, %v225_v53  ;;  %v284_v16 = vadd.f32 %v283_v12, %v269_v11 }
 0x107   :  { %v248_v18 = vadd.f32 %v411_v51, %v247_v15  ;;  %v285_v19 = vadd.f32 %v284_v16, %v270_v14 }
 0x109   :  { %v249_v20 = vrot.slane %v248_v18, 4  ;;  %v286_v21 = vadd.f32 %v285_v19, %v271_v17 }
 0x10b   :  { %v250_v22 = vadd.f32 %v249_v20, %v248_v18  ;;  %v287_v23 = vrot.slane %v286_v21, 4 }
 0x10d   :  { %v251_v24 = vrot.slane %v250_v22, 2  ;;  %v288_v25 = vadd.f32 %v287_v23, %v286_v21 }
 0x10f   :  { %v252_v26 = vadd.f32 %v251_v24, %v250_v22  ;;  %v289_v27 = vrot.slane %v288_v25, 2 }
 0x111   :  { %v253_v28 = vrot.slane %v252_v26, 1  ;;  %v290_v29 = vadd.f32 %v289_v27, %v288_v25 }
 0x113   :  { %v254_v30 = vadd.f32 %v253_v28, %v252_v26  ;;  %v291_v31 = vrot.slane %v290_v29, 1 }
 0x115   :  { %255 = vst [vmem:[#allocation4] sm:$0x1] %v254_v30  ;;  %v292_v32 = vadd.f32 %v291_v31, %v290_v29 }
 0x117   :  { %293 = vst [vmem:[#allocation4 + $0x1] sm:$0x1] %v292_v32 }
 0x118   :  { %463 = shalt.err (!%p460_p12)
}
 0x119   :  { %s464_s15 = scalar_lea.hbm %s626_s3, 128 }
 0x11a   :  { %p465_p13 = scmp.ne.s32.totalorder %s626_s3, %s464_s15  ;;  %p468_p0 = scmp.lt.u32.totalorder %s464_s15, %s626_s3 }
 0x11c   :  { %p470_p1 = pnand %p468_p0, %p465_p13 }
 0x11e   :  { %473 = shalt.err (!%p470_p1)
}
 0x11f   :  { %331 = dma.vmem_to_hbm [thread:$0]  %s329_s11, 128, %s626_s3, [#allocation5]  }
 0x120   :  { %474 = dma.done.wait [#allocation3], 2048  }
 0x121   :  { %475 = vsyncadd [#allocation3], 4294965248 }
 0x122   :  { %476 = dma.done.wait [#allocation5], 128  }
 0x123   :  { %477 = vsyncadd [#allocation5], 4294967168 }
 0x124   :  { %338 = vsyncpa [#allocation3], 1 }
 0x125   :  { %339 = vsyncpa [#allocation5], 1 }

</bundles_post_ra>
